<compile_context>
chip_gen: v5e
topology: v5e:2x2
jax: 0.10.0
libtpu: 0.0.40
codegen_flags: <defaults>
</compile_context>

<pallas_src>
import functools
import math

import jax
import jax.numpy as jnp
from jax import lax
from jax.experimental import pallas as pl
from jax.experimental.pallas import tpu as pltpu

_NEG = -1e30  # large finite "minus infinity" (avoids inf arithmetic edge cases)


def _round_up(x, m):
    return ((x + m - 1) // m) * m


# ----------------------------------------------------------------------------
# Kernel 1: row-wise prep — normalize to bf16 + positive logits.
# ----------------------------------------------------------------------------
def _prep_kernel(p_ref, q_ref, phat_ref, pos_ref, *, sqrt_eps, inv_temp):
    p = p_ref[...]                                        # (TM, Dp) f32
    q = q_ref[...]                                        # partner rows (rolled by N)

    pn = jnp.sum(p * p, axis=1, keepdims=True)            # (TM, 1)
    qn = jnp.sum(q * q, axis=1, keepdims=True)
    inv_p = pl.reciprocal(jnp.maximum(jnp.sqrt(pn), sqrt_eps), approx=True)
    inv_q = pl.reciprocal(jnp.maximum(jnp.sqrt(qn), sqrt_eps), approx=True)

    phat_ref[...] = (p * inv_p).astype(jnp.bfloat16)      # bf16 MXU operands
    pos_ref[...] = jnp.sum(p * q, axis=1, keepdims=True) * (inv_p * inv_q) * inv_temp


# ----------------------------------------------------------------------------
# Kernel 2: streaming similarity + online logsumexp.
# ----------------------------------------------------------------------------
def _nt_xent_kernel(*refs, inv_temp, n_valid_rows, tm, has_pad):
    if has_pad:
        phr, phc, pos, dbias, cbias, o_ref, m_sc, l_sc = refs
    else:
        phr, phc, pos, dbias, o_ref, m_sc, l_sc = refs
        cbias = None

    i = pl.program_id(0)
    j = pl.program_id(1)

    @pl.when(j == 0)
    def _():
        m_sc[...] = jnp.full_like(m_sc, _NEG)
        l_sc[...] = jnp.zeros_like(l_sc)

    # bf16 MXU matmul contracting the feature axis of both tiles (RHS not transposed).
    s = lax.dot_general(
        phr[...], phc[...],
        dimension_numbers=(((1,), (1,)), ((), ())),
        preferred_element_type=jnp.float32,
    )                                                     # (TM, TN) f32
    s = s * inv_temp + dbias[0]                           # diag bias only on i == j tiles
    if cbias is not None:                                 # static: only when padded cols exist
        s = s + cbias[...]

    m_prev = m_sc[...]
    m_new = jnp.maximum(m_prev, jnp.max(s, axis=1, keepdims=True))
    alpha = jnp.exp(m_prev - m_new)
    l_sc[...] = alpha * l_sc[...] + jnp.sum(jnp.exp(s - m_new), axis=1, keepdims=True)
    m_sc[...] = m_new

    @pl.when(j == pl.num_programs(1) - 1)
    def _():
        lse = m_sc[...] + jnp.log(l_sc[...])              # (TM, 1)
        per_row = lse - pos[...]
        if has_pad:                                       # static: mask padded rows
            rowg = i * tm + lax.broadcasted_iota(jnp.int32, (tm, 1), 0)
            per_row = jnp.where(rowg < n_valid_rows, per_row, 0.0)
        o_ref[...] = jnp.broadcast_to(per_row, (tm, 128))


# ----------------------------------------------------------------------------
# Wrapper
# ----------------------------------------------------------------------------
def nt_xent_loss(z_i, z_j, temperature, eps=1e-8):
    n, d = z_i.shape
    r = 2 * n
    dp = _round_up(max(d, 1), 128)                        # lane-align feature dim
    if r >= 256:
        tm = 256                                          # MXU-friendly on v5e/v6e/v7x
    else:
        tm = _round_up(r, 8)                              # single full-dim block
    tn = tm                                               # square tiles: diag lives in (i, i)
    rp = _round_up(r, tm)
    nrb = rp // tm
    ncb = rp // tn
    has_pad = rp > r

    inv_temp = 1.0 / float(temperature)
    sqrt_eps = math.sqrt(float(eps))

    p = jnp.concatenate([z_i, z_j], axis=0).astype(jnp.float32)       # (2N, D)
    p_part = jnp.concatenate([z_j, z_i], axis=0).astype(jnp.float32)  # rows rolled by N
    pad = ((0, rp - r), (0, dp - d))
    p = jnp.pad(p, pad)
    p_part = jnp.pad(p_part, pad)

    # ---- prep: normalized bf16 features + positive logits -------------------
    p_hat, pos = pl.pallas_call(
        functools.partial(_prep_kernel, sqrt_eps=sqrt_eps, inv_temp=inv_temp),
        out_shape=(
            jax.ShapeDtypeStruct((rp, dp), jnp.bfloat16),
            jax.ShapeDtypeStruct((rp, 1), jnp.float32),
        ),
        grid_spec=pltpu.PrefetchScalarGridSpec(
            num_scalar_prefetch=0,
            grid=(nrb,),
            in_specs=[
                pl.BlockSpec((tm, dp), lambda i: (i, 0)),
                pl.BlockSpec((tm, dp), lambda i: (i, 0)),
            ],
            out_specs=[
                pl.BlockSpec((tm, dp), lambda i: (i, 0)),
                pl.BlockSpec((tm, 1), lambda i: (i, 0)),
            ],
        ),
        compiler_params=pltpu.CompilerParams(dimension_semantics=("parallel",)),
    )(p, p_part)

    # ---- small additive-bias inputs -----------------------------------------
    eye = jnp.arange(tm)[:, None] == jnp.arange(tn)[None, :]
    diag_bias = jnp.stack(
        [jnp.zeros((tm, tn), jnp.float32),
         jnp.where(eye, jnp.float32(_NEG), jnp.float32(0.0))],
        axis=0,
    )                                                     # (2, TM, TN)

    in_specs = [
        pl.BlockSpec((tm, dp), lambda i, j: (i, 0)),      # row tile of p_hat
        pl.BlockSpec((tn, dp), lambda i, j: (j, 0)),      # col tile of p_hat
        pl.BlockSpec((tm, 1), lambda i, j: (i, 0)),       # positives
        pl.BlockSpec((1, tm, tn),                         # diag slab 1 iff i == j
                     lambda i, j: (1 - jnp.minimum(jnp.abs(i - j), 1), 0, 0)),
    ]
    args = [p_hat, p_hat, pos, diag_bias]
    if has_pad:
        col_bias = jnp.where(jnp.arange(rp) >= r,
                             jnp.float32(_NEG), jnp.float32(0.0))[None, :]  # (1, Rp)
        in_specs.append(pl.BlockSpec((1, tn), lambda i, j: (0, j)))
        args.append(col_bias)

    # ---- streaming LSE kernel ------------------------------------------------
    out = pl.pallas_call(
        functools.partial(_nt_xent_kernel, inv_temp=inv_temp,
                          n_valid_rows=r, tm=tm, has_pad=has_pad),
        out_shape=jax.ShapeDtypeStruct((rp, 128), jnp.float32),
        grid_spec=pltpu.PrefetchScalarGridSpec(
            num_scalar_prefetch=0,
            grid=(nrb, ncb),                              # reduction (col) axis last
            in_specs=in_specs,
            out_specs=pl.BlockSpec((tm, 128), lambda i, j: (i, 0)),
            scratch_shapes=[
                pltpu.VMEM((tm, 1), jnp.float32),         # running max
                pltpu.VMEM((tm, 1), jnp.float32),         # running sum
            ],
        ),
        compiler_params=pltpu.CompilerParams(
            dimension_semantics=("parallel", "arbitrary")),
    )(*args)

    return jnp.sum(out[:, 0]) / jnp.float32(r)


# ----------------------------------------------------------------------------
# Plain-JAX reference (replica of the PyTorch forward) for correctness checks.
# ----------------------------------------------------------------------------
def nt_xent_reference(z_i, z_j, temperature):
    n = z_i.shape[0]
    p = jnp.concatenate([z_i, z_j], axis=0).astype(jnp.float32)
    norms = jnp.sqrt(jnp.sum(p * p, axis=1, keepdims=True))
    denom = jnp.maximum(norms * norms.T, 1e-8)
    sim = (p @ p.T) / denom / temperature
    n2 = 2 * n
    idx = jnp.arange(n2)
    pos = sim[idx, (idx + n) % n2]
    sim_no_diag = jnp.where(jnp.eye(n2, dtype=bool), -jnp.inf, sim)
    lse = jax.scipy.special.logsumexp(sim_no_diag, axis=1)
    return jnp.sum(lse - pos) / n2


if __name__ == "__main__":
    temperature = 0.5
    key = jax.random.PRNGKey(0)

    # (4, 32): no row padding; (5, 48): exercises the row/column padding path.
    for batch_size, dim in ((4, 32), (5, 48)):
        k1, k2 = jax.random.split(jax.random.fold_in(key, batch_size))
        z_i = jax.random.normal(k1, (batch_size, dim), dtype=jnp.float32)
        z_j = jax.random.normal(k2, (batch_size, dim), dtype=jnp.float32)

        loss = nt_xent_loss(z_i, z_j, temperature)
        jax.block_until_ready(loss)

        ref = nt_xent_reference(z_i, z_j, temperature)
        # bf16 MXU operands + approx reciprocal -> slightly looser tolerance than f32.
        assert abs(float(loss) - float(ref)) < 3e-2, (batch_size, float(loss), float(ref))

    print("KERNEL_OK")
</pallas_src>

<mosaic_0001>
module attributes {stable_mosaic.version = 11 : i64} {
  func.func @_prep_kernel(%arg0: i32, %arg1: memref<8x128xf32, #tpu.memory_space<vmem>>, %arg2: memref<8x128xf32, #tpu.memory_space<vmem>>, %arg3: memref<8x128xbf16, #tpu.memory_space<vmem>>, %arg4: memref<8x1xf32, #tpu.memory_space<vmem>>) attributes {dimension_semantics = [#tpu.dimension_semantics<parallel>], iteration_bounds = array<i64: 1>, scalar_prefetch = 0 : i64, scratch_operands = 0 : i64, tpu.core_type = #tpu.core_type<tc>, window_params = [{transform_indices = @transform_0, window_bounds = array<i64: 8, 128>}, {transform_indices = @transform_1, window_bounds = array<i64: 8, 128>}, {transform_indices = @transform_2, window_bounds = array<i64: 8, 128>}, {transform_indices = @transform_3, window_bounds = array<i64: 8, 1>}]} {
    %c0 = arith.constant 0 : index
    %c0_0 = arith.constant 0 : index
    %0 = vector.load %arg1[%c0, %c0_0] : memref<8x128xf32, #tpu.memory_space<vmem>>, vector<8x128xf32>
    %c0_1 = arith.constant 0 : index
    %c0_2 = arith.constant 0 : index
    %1 = vector.load %arg2[%c0_1, %c0_2] : memref<8x128xf32, #tpu.memory_space<vmem>>, vector<8x128xf32>
    %2 = arith.mulf %0, %0 : vector<8x128xf32>
    %cst = arith.constant dense<0.000000e+00> : vector<8xf32>
    %3 = vector.multi_reduction <add>, %2, %cst [1] : vector<8x128xf32> to vector<8xf32>
    %4 = vector.shape_cast %3 : vector<8xf32> to vector<8x1xf32>
    %5 = arith.mulf %1, %1 : vector<8x128xf32>
    %cst_3 = arith.constant dense<0.000000e+00> : vector<8xf32>
    %6 = vector.multi_reduction <add>, %5, %cst_3 [1] : vector<8x128xf32> to vector<8xf32>
    %7 = vector.shape_cast %6 : vector<8xf32> to vector<8x1xf32>
    %8 = math.sqrt %4 : vector<8x1xf32>
    %cst_4 = arith.constant 9.99999974E-5 : f32
    %9 = vector.broadcast %cst_4 : f32 to vector<8x1xf32>
    %10 = arith.maximumf %8, %9 : vector<8x1xf32>
    %11 = tpu.reciprocal %10 {approx = true} : vector<8x1xf32> -> vector<8x1xf32>
    %12 = math.sqrt %7 : vector<8x1xf32>
    %cst_5 = arith.constant 9.99999974E-5 : f32
    %13 = vector.broadcast %cst_5 : f32 to vector<8x1xf32>
    %14 = arith.maximumf %12, %13 : vector<8x1xf32>
    %15 = tpu.reciprocal %14 {approx = true} : vector<8x1xf32> -> vector<8x1xf32>
    %16 = vector.broadcast %11 : vector<8x1xf32> to vector<8x128xf32>
    %17 = arith.mulf %0, %16 : vector<8x128xf32>
    %18 = arith.truncf %17 : vector<8x128xf32> to vector<8x128xbf16>
    %c0_6 = arith.constant 0 : index
    %c0_7 = arith.constant 0 : index
    %19 = vector.load %arg3[%c0_6, %c0_7] : memref<8x128xbf16, #tpu.memory_space<vmem>>, vector<8x128xbf16>
    tpu.vector_store %arg3[%c0_6, %c0_7], %18 {strides = array<i32>} : memref<8x128xbf16, #tpu.memory_space<vmem>>, vector<8x128xbf16>,
    %20 = arith.mulf %0, %1 : vector<8x128xf32>
    %cst_8 = arith.constant dense<0.000000e+00> : vector<8xf32>
    %21 = vector.multi_reduction <add>, %20, %cst_8 [1] : vector<8x128xf32> to vector<8xf32>
    %22 = vector.shape_cast %21 : vector<8xf32> to vector<8x1xf32>
    %23 = arith.mulf %11, %15 : vector<8x1xf32>
    %24 = arith.mulf %22, %23 : vector<8x1xf32>
    %cst_9 = arith.constant 2.000000e+00 : f32
    %25 = vector.broadcast %cst_9 : f32 to vector<8x1xf32>
    %26 = arith.mulf %24, %25 : vector<8x1xf32>
    %c0_10 = arith.constant 0 : index
    %c0_11 = arith.constant 0 : index
    %27 = vector.load %arg4[%c0_10, %c0_11] : memref<8x1xf32, #tpu.memory_space<vmem>>, vector<8x1xf32>
    tpu.vector_store %arg4[%c0_10, %c0_11], %26 {strides = array<i32>} : memref<8x1xf32, #tpu.memory_space<vmem>>, vector<8x1xf32>,
    return
  }
  func.func @transform_0(%arg0: i32) -> (i32, i32) {
    %c0_i32 = arith.constant 0 : i32
    %c0_i32_0 = arith.constant 0 : i32
    return %arg0, %c0_i32 : i32, i32
  }
  func.func @transform_1(%arg0: i32) -> (i32, i32) {
    %c0_i32 = arith.constant 0 : i32
    %c0_i32_0 = arith.constant 0 : i32
    return %arg0, %c0_i32 : i32, i32
  }
  func.func @transform_2(%arg0: i32) -> (i32, i32) {
    %c0_i32 = arith.constant 0 : i32
    %c0_i32_0 = arith.constant 0 : i32
    return %arg0, %c0_i32 : i32, i32
  }
  func.func @transform_3(%arg0: i32) -> (i32, i32) {
    %c0_i32 = arith.constant 0 : i32
    %c0_i32_0 = arith.constant 0 : i32
    return %arg0, %c0_i32 : i32, i32
  }
}

</mosaic_0001>

<bundles_post_ra>
// kernel: tpu_custom_call.1
= control target key start
LH: loop header
LB: loop body
LE: loop exit
PB: predicated region body
PF: predicated region fallthrough
CT: control target
= control target key end

     0   :  { %9 = vsyncpa [#allocation3], 0  ;;  %s235_s0 = inlined_call_operand.hbm [shape: f32[8,128], index: 0, kind: input, shape index: {}]   ;;  %s236_s1 = inlined_call_operand.hbm [shape: f32[8,128], index: 1, kind: input, shape index: {}]   ;;  %s237_s2 = inlined_call_operand.hbm [shape: bf16[8,128], index: 2, kind: output, shape index: {0}]   ;;  %s238_s3 = inlined_call_operand.vmem [shape: f32[8,1], index: 3, kind: output, shape index: {1}]  }
   0x1   :  { %10 = vsyncpa [#allocation6], 0 }
   0x2   :  { %11 = vsyncpa [#allocation4], 0  ;;  %s17_s14 = sshll.u32 %s235_s0, 4  ;;  %s200_s15 = smov [#allocation2]   ;;  %s18_s14 = int_to_ptr.hbm [resolvable:$true] %s17_s14 }
   0x3   :  { %s19_s16 = sshll.u32 %s200_s15, 4  ;;  %s28_s19 = sshll.u32 %s236_s1, 4  ;;  %s20_s16 = int_to_ptr.vmem [resolvable:$true] %s19_s16  ;;  %s29_s19 = int_to_ptr.hbm [resolvable:$true] %s28_s19 }
   0x4   :  { %22 = dma.hbm_to_vmem [thread:$0]  %s18_s14, 128, %s20_s16, [#allocation3]  }
   0x5   :  { %s201_s20 = smov [#allocation5]  }
   0x6   :  { %s30_s21 = sshll.u32 %s201_s20, 4  ;;  %s31_s21 = int_to_ptr.vmem [resolvable:$true] %s30_s21 }
   0x7   :  { %33 = dma.hbm_to_vmem [thread:$0]  %s29_s19, 128, %s31_s21, [#allocation6]  }
   0x8   :  { %194 = dma.done.wait [#allocation3], 128  }
   0x9   :  { %195 = vsyncadd [#allocation3], 4294967168 }
   0xa   :  { %196 = dma.done.wait [#allocation6], 128  }
   0xb   :  { %197 = vsyncadd [#allocation6], 4294967168  ;;  %v42_v0 = vld [vmem:[#allocation2] sm:$0xff]  ;;  %v43_v1 = vld [vmem:[#allocation5] sm:$0xff]  ;;  %s202_s0 = smov [#allocation7]   ;;  %s96_s24 = sshll.u32 %s237_s2, 4  ;;  %s97_s24 = int_to_ptr.hbm [resolvable:$true] %s96_s24 }
   0xc   :  { %v44_v2 = vmul.f32 %v42_v0, %v42_v0  ;;  %v81_v3 = vmul.f32 %v43_v1, %v42_v0  ;;  %v47_v4 = vmul.f32 %v43_v1, %v43_v1  ;;  %s94_s1 = sshll.u32 %s202_s0, 4  ;;  %vm87_vm4 = vcmask 7168   ;;  %s95_s1 = int_to_ptr.vmem [resolvable:$true] %s94_s1 }
   0xe   :  { %45 = vadd.xlane.f32.xlu0 %v44_v2  ;;  %82 = vadd.xlane.f32.xlu1 %v81_v3 }
  0x16   :  { %48 = vadd.xlane.f32.xlu0 %v47_v4 }
  0x81   :  { %v46_v5 = vpop.xlane.xlu0 %45  ;;  %v83_v33 = vpop.xlane.xlu1 %82 }
  0x82   :  { %114 = vrsqrt.f32 %v46_v5  ;;  %vm57_vm0 = vcmp.eq.f32.partialorder %v46_v5, inf  ;;  %v60_v17 = vand.u32 2147483648, %v46_v5  ;;  %vm59_vm1 = vcmp.eq.f32.partialorder %v46_v5, 0.0 }
  0x88   :  { %v115_v6 = vpop.eup %114 }
  0x89   :  { %v51_v7 = vmul.f32 %v115_v6, %v46_v5  ;;  %v49_v8 = vpop.xlane.xlu0 %48 }
  0x8a   :  { %116 = vrsqrt.f32 %v49_v8  ;;  %vm71_vm2 = vcmp.eq.f32.partialorder %v49_v8, inf  ;;  %v74_v25 = vand.u32 2147483648, %v49_v8  ;;  %vm73_vm3 = vcmp.eq.f32.partialorder %v49_v8, 0.0 }
  0x8b   :  { %v52_v9 = vmul.f32 %v115_v6, %v51_v7 }
  0x8d   :  { %v53_v10 = vmul.f32 0.5, %v52_v9 }
  0x8f   :  { %v54_v11 = vsub.f32 1.5, %v53_v10 }
  0x90   :  { %v117_v12 = vpop.eup %116 }
  0x91   :  { %v55_v13 = vmul.f32 %v115_v6, %v54_v11  ;;  %v65_v14 = vmul.f32 %v117_v12, %v49_v8 }
  0x93   :  { %v56_v15 = vmul.f32 %v55_v13, %v46_v5  ;;  %v66_v16 = vmul.f32 %v117_v12, %v65_v14 }
  0x95   :  { %v67_v18 = vmul.f32 0.5, %v66_v16  ;;  %v58_v19 = vsel %vm57_vm0, %v46_v5, %v56_v15 }
  0x96   :  { %v61_v20 = vsel %vm59_vm1, %v60_v17, %v58_v19 }
  0x97   :  { %v68_v21 = vsub.f32 1.5, %v67_v18  ;;  %v62_v22 = vmax.f32 %v61_v20, 0.0001 }
  0x99   :  { %v69_v23 = vmul.f32 %v117_v12, %v68_v21  ;;  %118 = vrcp.f32 %v62_v22 }
  0x9b   :  { %v70_v24 = vmul.f32 %v69_v23, %v49_v8 }
  0x9d   :  { %v72_v26 = vsel %vm71_vm2, %v49_v8, %v70_v24 }
  0x9e   :  { %v75_v27 = vsel %vm73_vm3, %v74_v25, %v72_v26 }
  0x9f   :  { %v119_v28 = vpop.eup %118  ;;  %v76_v29 = vmax.f32 %v75_v27, 0.0001 }
  0xa0   :  { %v78_v30 = vmul.f32 %v119_v28, %v42_v0 }
  0xa1   :  { %120 = vrcp.f32 %v76_v29 }
  0xa2   :  { %v79_v31 = vpack.c.bf16 %v78_v30, %v78_v30 }
  0xa4   :  { %80 = vst [vmem:[#allocation7] sm:$0xf] %v79_v31 }
  0xa5   :  { %99 = dma.vmem_to_hbm [thread:$0]  %s95_s1, 64, %s97_s24, [#allocation4]  }
  0xa7   :  { %v121_v32 = vpop.eup %120 }
  0xa8   :  { %v84_v34 = vmul.f32 %v121_v32, %v119_v28 }
  0xaa   :  { %v85_v35 = vmul.f32 %v84_v34, %v83_v33 }
  0xac   :  { %v86_v36 = vmul.f32 2.0, %v85_v35 }
  0xae   :  { %88 = vst.msk [vmem:[%s238_s3] sm:$0xff] %vm87_vm4, %v86_v36 }
  0xaf   :  { %198 = dma.done.wait [#allocation4], 64  }
  0xb0   :  { %199 = vsyncadd [#allocation4], 4294967232 }
  0xb1   :  { %108 = vsyncpa [#allocation3], 1 }
  0xb2   :  { %109 = vsyncpa [#allocation6], 1 }
  0xb3   :  { %110 = vsyncpa [#allocation4], 1 }

</bundles_post_ra>
